<compile_context>
chip_gen: v5e
topology: v5e:2x2
jax: 0.10.0
libtpu: 0.0.40
codegen_flags: <defaults>
</compile_context>

<pallas_src>
import jax
import jax.numpy as jnp
from jax.experimental import pallas as pl
from jax.experimental.pallas import tpu as pltpu


def _linear_kernel(x_ref, w_ref, b_ref, o_ref):
    # x_ref: (1, C_in, tn)   activations, spatial on the lane axis
    # w_ref: (C_out, C_in)   resident weight
    # b_ref: (C_out, 1)      resident bias (sublane vector)
    # o_ref: (1, C_out, tn)  lane-dense output tile (natively NCHW)
    c_out, c_in = w_ref.shape

    acc = b_ref[...].astype(jnp.float32)  # (C_out, 1) -> lane-broadcast on first add

    if c_in <= 16:
        # Tiny contraction: C_in fused multiply-adds on the VPU. The MXU would
        # be <1% utilized at K=C_in and only add push/pop latency.
        for i in range(c_in):
            w_col = w_ref[:, i:i + 1].astype(jnp.float32)     # (C_out, 1)  lane bcast
            x_row = x_ref[0, i:i + 1, :].astype(jnp.float32)  # (1, tn)     sublane bcast
            acc = acc + w_col * x_row                         # (C_out, tn)
    else:
        # Large channel counts: fall back to the MXU.
        acc = acc + jnp.dot(
            w_ref[...].astype(jnp.float32),
            x_ref[0].astype(jnp.float32),
            preferred_element_type=jnp.float32,
        )

    o_ref[0] = acc.astype(o_ref.dtype)


def linear_1x1_conv(x_nchw, weight, bias, *, tn=None):
    """1x1 Conv2d (stride 1, bias=True) forward pass.

    x_nchw : (B, C_in, H, W)
    weight : (C_out, C_in) or (C_out, C_in, 1, 1)   (Conv2d weight)
    bias   : (C_out,)
    returns: (B, C_out, H, W)
    """
    B, C_in, H, W = x_nchw.shape
    C_out = weight.shape[0]
    HW = H * W

    # ---- tile sizing: lane-dense, few-MiB working set per grid step --------
    if tn is None:
        bytes_per = 4  # compute/accumulate in f32
        # double-buffered input + output slabs per lane column
        per_lane = 2 * (C_in + C_out) * bytes_per
        target_bytes = 2 * 1024 * 1024  # conservative for v7x's 64 MiB VMEM too
        tn = max(128, min(32 * 1024, (target_bytes // per_lane) // 128 * 128))
    hw_aligned = pl.cdiv(HW, 128) * 128
    tn = min(tn, hw_aligned)          # tn stays a multiple of 128
    HW_pad = pl.cdiv(HW, tn) * tn

    # ---- reshape (no transpose, no extra HBM pass) --------------------------
    x = x_nchw.reshape(B, C_in, HW)
    if HW_pad != HW:
        x = jnp.pad(x, ((0, 0), (0, 0), (0, HW_pad - HW)))

    w = weight.reshape(C_out, C_in)   # keep weight dtype; cast to f32 in-kernel
    b = bias.reshape(C_out, 1)

    grid = (B, HW_pad // tn)

    out = pl.pallas_call(
        _linear_kernel,
        out_shape=jax.ShapeDtypeStruct((B, C_out, HW_pad), x_nchw.dtype),
        grid_spec=pltpu.PrefetchScalarGridSpec(
            num_scalar_prefetch=0,
            grid=grid,
            in_specs=[
                pl.BlockSpec((1, C_in, tn), lambda b_, j: (b_, 0, j)),
                pl.BlockSpec((C_out, C_in), lambda b_, j: (0, 0)),   # VMEM-resident
                pl.BlockSpec((C_out, 1), lambda b_, j: (0, 0)),      # VMEM-resident
            ],
            out_specs=pl.BlockSpec((1, C_out, tn), lambda b_, j: (b_, 0, j)),
        ),
        compiler_params=pltpu.CompilerParams(
            dimension_semantics=("parallel", "parallel"),
        ),
    )(x, w, b)

    if HW_pad != HW:
        out = out[:, :, :HW]
    return out.reshape(B, C_out, H, W)


if __name__ == "__main__":
    # Small shapes consistent with the module: batch=2, c_in=4, c_out=8,
    # spatial H=16 (nodes), W=16 (time steps).
    B, C_in, C_out, H, W = 2, 4, 8, 16, 16

    key = jax.random.PRNGKey(0)
    kx, kw, kb = jax.random.split(key, 3)

    x = jax.random.normal(kx, (B, C_in, H, W), dtype=jnp.float32)
    # Conv2d weight (C_out, C_in, 1, 1) squeezed to (C_out, C_in).
    weight = jax.random.normal(kw, (C_out, C_in), dtype=jnp.float32) * 0.1
    bias = jax.random.normal(kb, (C_out,), dtype=jnp.float32) * 0.1

    out = linear_1x1_conv(x, weight, bias)
    out = jax.block_until_ready(out)

    # Reference check against plain-JAX einsum (same semantics as Conv2d 1x1).
    ref = jnp.einsum("bihw,oi->bohw", x, weight) + bias[None, :, None, None]
    assert out.shape == (B, C_out, H, W)
    assert jnp.allclose(out, ref, atol=1e-5, rtol=1e-5)

    print("KERNEL_OK")
</pallas_src>

<mosaic_0001>
module attributes {stable_mosaic.version = 11 : i64} {
  func.func @_linear_kernel(%arg0: i32, %arg1: i32, %arg2: memref<1x4x256xf32, #tpu.memory_space<vmem>>, %arg3: memref<8x4xf32, #tpu.memory_space<vmem>>, %arg4: memref<8x1xf32, #tpu.memory_space<vmem>>, %arg5: memref<1x8x256xf32, #tpu.memory_space<vmem>>) attributes {dimension_semantics = [#tpu.dimension_semantics<parallel>, #tpu.dimension_semantics<parallel>], iteration_bounds = array<i64: 2, 1>, scalar_prefetch = 0 : i64, scratch_operands = 0 : i64, tpu.core_type = #tpu.core_type<tc>, window_params = [{transform_indices = @transform_0, window_bounds = array<i64: 1, 4, 256>}, {pipeline_mode = #tpu.pipeline_mode<synchronous>, transform_indices = @transform_1, window_bounds = array<i64: 8, 4>}, {pipeline_mode = #tpu.pipeline_mode<synchronous>, transform_indices = @transform_2, window_bounds = array<i64: 8, 1>}, {transform_indices = @transform_3, window_bounds = array<i64: 1, 8, 256>}]} {
    %c0 = arith.constant 0 : index
    %c0_0 = arith.constant 0 : index
    %0 = vector.load %arg4[%c0, %c0_0] : memref<8x1xf32, #tpu.memory_space<vmem>>, vector<8x1xf32>
    %c0_1 = arith.constant 0 : index
    %c0_2 = arith.constant 0 : index
    %1 = vector.load %arg3[%c0_1, %c0_2] : memref<8x4xf32, #tpu.memory_space<vmem>>, vector<8x1xf32>
    %c0_3 = arith.constant 0 : index
    %c0_4 = arith.constant 0 : index
    %c0_5 = arith.constant 0 : index
    %2 = vector.load %arg2[%c0_3, %c0_4, %c0_5] : memref<1x4x256xf32, #tpu.memory_space<vmem>>, vector<1x1x256xf32>
    %3 = vector.shape_cast %2 : vector<1x1x256xf32> to vector<1x256xf32>
    %4 = vector.broadcast %1 : vector<8x1xf32> to vector<8x256xf32>
    %5 = vector.broadcast %3 : vector<1x256xf32> to vector<8x256xf32>
    %6 = arith.mulf %4, %5 : vector<8x256xf32>
    %7 = vector.broadcast %0 : vector<8x1xf32> to vector<8x256xf32>
    %8 = arith.addf %7, %6 : vector<8x256xf32>
    %c0_6 = arith.constant 0 : index
    %c1 = arith.constant 1 : index
    %9 = vector.load %arg3[%c0_6, %c1] : memref<8x4xf32, #tpu.memory_space<vmem>>, vector<8x1xf32>
    %c0_7 = arith.constant 0 : index
    %c1_8 = arith.constant 1 : index
    %c0_9 = arith.constant 0 : index
    %10 = vector.load %arg2[%c0_7, %c1_8, %c0_9] : memref<1x4x256xf32, #tpu.memory_space<vmem>>, vector<1x1x256xf32>
    %11 = vector.shape_cast %10 : vector<1x1x256xf32> to vector<1x256xf32>
    %12 = vector.broadcast %9 : vector<8x1xf32> to vector<8x256xf32>
    %13 = vector.broadcast %11 : vector<1x256xf32> to vector<8x256xf32>
    %14 = arith.mulf %12, %13 : vector<8x256xf32>
    %15 = arith.addf %8, %14 : vector<8x256xf32>
    %c0_10 = arith.constant 0 : index
    %c2 = arith.constant 2 : index
    %16 = vector.load %arg3[%c0_10, %c2] : memref<8x4xf32, #tpu.memory_space<vmem>>, vector<8x1xf32>
    %c0_11 = arith.constant 0 : index
    %c2_12 = arith.constant 2 : index
    %c0_13 = arith.constant 0 : index
    %17 = vector.load %arg2[%c0_11, %c2_12, %c0_13] : memref<1x4x256xf32, #tpu.memory_space<vmem>>, vector<1x1x256xf32>
    %18 = vector.shape_cast %17 : vector<1x1x256xf32> to vector<1x256xf32>
    %19 = vector.broadcast %16 : vector<8x1xf32> to vector<8x256xf32>
    %20 = vector.broadcast %18 : vector<1x256xf32> to vector<8x256xf32>
    %21 = arith.mulf %19, %20 : vector<8x256xf32>
    %22 = arith.addf %15, %21 : vector<8x256xf32>
    %c0_14 = arith.constant 0 : index
    %c3 = arith.constant 3 : index
    %23 = vector.load %arg3[%c0_14, %c3] : memref<8x4xf32, #tpu.memory_space<vmem>>, vector<8x1xf32>
    %c0_15 = arith.constant 0 : index
    %c3_16 = arith.constant 3 : index
    %c0_17 = arith.constant 0 : index
    %24 = vector.load %arg2[%c0_15, %c3_16, %c0_17] : memref<1x4x256xf32, #tpu.memory_space<vmem>>, vector<1x1x256xf32>
    %25 = vector.shape_cast %24 : vector<1x1x256xf32> to vector<1x256xf32>
    %26 = vector.broadcast %23 : vector<8x1xf32> to vector<8x256xf32>
    %27 = vector.broadcast %25 : vector<1x256xf32> to vector<8x256xf32>
    %28 = arith.mulf %26, %27 : vector<8x256xf32>
    %29 = arith.addf %22, %28 : vector<8x256xf32>
    %c0_18 = arith.constant 0 : index
    %c0_19 = arith.constant 0 : index
    %c0_20 = arith.constant 0 : index
    %30 = vector.load %arg5[%c0_18, %c0_19, %c0_20] : memref<1x8x256xf32, #tpu.memory_space<vmem>>, vector<1x8x256xf32>
    %31 = vector.shape_cast %30 : vector<1x8x256xf32> to vector<8x256xf32>
    %32 = vector.shape_cast %29 : vector<8x256xf32> to vector<1x8x256xf32>
    tpu.vector_store %arg5[%c0_18, %c0_19, %c0_20], %32 {strides = array<i32>} : memref<1x8x256xf32, #tpu.memory_space<vmem>>, vector<1x8x256xf32>,
    return
  }
  func.func @transform_0(%arg0: i32, %arg1: i32) -> (i32, i32, i32) {
    %c0_i32 = arith.constant 0 : i32
    %c0_i32_0 = arith.constant 0 : i32
    return %arg0, %c0_i32, %arg1 : i32, i32, i32
  }
  func.func @transform_1(%arg0: i32, %arg1: i32) -> (i32, i32) {
    %c0_i32 = arith.constant 0 : i32
    %c0_i32_0 = arith.constant 0 : i32
    %c0_i32_1 = arith.constant 0 : i32
    return %c0_i32, %c0_i32_0 : i32, i32
  }
  func.func @transform_2(%arg0: i32, %arg1: i32) -> (i32, i32) {
    %c0_i32 = arith.constant 0 : i32
    %c0_i32_0 = arith.constant 0 : i32
    %c0_i32_1 = arith.constant 0 : i32
    return %c0_i32, %c0_i32_0 : i32, i32
  }
  func.func @transform_3(%arg0: i32, %arg1: i32) -> (i32, i32, i32) {
    %c0_i32 = arith.constant 0 : i32
    %c0_i32_0 = arith.constant 0 : i32
    return %arg0, %c0_i32, %arg1 : i32, i32, i32
  }
}

</mosaic_0001>

<bundles_post_ra>
// kernel: tpu_custom_call.1
= control target key start
LH: loop header
LB: loop body
LE: loop exit
PB: predicated region body
PF: predicated region fallthrough
CT: control target
= control target key end

     0   :  { %8 = vsyncpa [#allocation3], 0  ;;  %s657_s0 = inlined_call_operand.vmem [shape: f32[2,4,256], index: 0, kind: input, shape index: {}]   ;;  %s658_s1 = inlined_call_operand.vmem [shape: f32[8,4], index: 1, kind: input, shape index: {}]   ;;  %s659_s2 = inlined_call_operand.vmem [shape: f32[8,1], index: 2, kind: input, shape index: {}]   ;;  %s660_s3 = inlined_call_operand.hbm [shape: f32[2,8,256], index: 3, kind: output, shape index: {}]  }
   0x1   :  { %10 = vsyncpa [#allocation3 + $0x1], 0  ;;  %s550_s12 = smov 0   ;;  %s552_s13 = smov 0  }
   0x2   :  { %s554_s14 = smov 0   ;;  %s556_s15 = smov 0  }
   0x3   :  { %s558_s16 = smov 0   ;;  %s560_s17 = smov 0  }
   0x4 LB: > { %s364_s18 = sadd.s32 4294967295, %s524_s17   ;;  %s365_s19 = sadd.s32 4294967294, %s524_s17   ;;  %s524_s17 = sphi %s560_s17, %s16_s17   ;;  %s520_s16 = sphi %s558_s16, %s667_s16   ;;  %s516_s15 = sphi %s556_s15, %s666_s15   ;;  %s512_s14 = sphi %s554_s14, %s665_s14   ;;  %s508_s13 = sphi %s552_s13, %s664_s13   ;;  %s504_s12 = sphi %s550_s12, %s663_s12  }
   0x5   : > { %s28_s20 = sadd.s32 1, %s520_s16  ;;  %s107_s21 = sadd.s32 1, %s512_s14 }
   0x6   : > { %p30_p0 = scmp.ge.s32.totalorder %s28_s20, 2  ;;  %p117_p1 = scmp.ne.s32.totalorder %s512_s14, %s508_s13 }
   0x7   : > { %p118_p2 = scmp.eq.s32.totalorder %s364_s18, 1  ;;  %p123_p3 = scmp.ne.s32.totalorder %s508_s13, %s504_s12 }
   0x8   : > { %s669_s20 = smov (%p30_p0, %s28_s20), 0  ;;  %p124_p5 = scmp.eq.s32.totalorder %s365_s19, 1 }
   0x9   : > { %p590_p4 = por %p118_p2, %p117_p1  ;;  %s102_s23 = ssub.s32 %s520_s16, %s669_s20 }
   0xa   : > { %p368_p6 = scmp.ge.s32.totalorder %s524_s17, 1  ;;  %p105_p7 = scmp.eq.s32.totalorder %s102_s23, 0 }
   0xb   : > { %p597_p8 = por %p124_p5, %p123_p3  ;;  %p161_p9 = scmp.lt.s32.totalorder %s524_s17, 3 }
   0xc   : > { %s603_s25 = scalar_select %p105_p7, %s512_s14, %s107_s21  }
   0xd   : > { %p162_p10 = pnand %p368_p6, %p161_p9 }
   0xe   : > { %p190_p11 = scmp.lt.s32.totalorder (!%p162_p10), %s516_s15, 1  ;;  %s186_s8 = sand.u32 (!%p162_p10), 1, %s508_s13  }
   0xf   : > { %165 = sbr.rel (%p162_p10) target bundleno = 157 (0x9d), region = 32  ;;  %s369_s9 = sshll.u32 (!%p162_p10), %s186_s8, 4 }
  0x10   : > { %s381_s10 = sshll.u32 (!%p162_p10), %s516_s15, 4  ;;  %s270_s26 = scalar_lea.sflag (!%p162_p10), [#allocation3], %s186_s8 }
  0x11   : > { %s283_s19 = scalar_lea.hbm (!%p162_p10), %s660_s3, %s381_s10 }
  0x12   : > { %s287_s23 = sshll.u32 (!%p162_p10), %s283_s19, 4  ;;  %s288_s23 = int_to_ptr.hbm [resolvable:$true] %s287_s23 }
  0x13   : > { %s460_s27 = sshra.s32 (!%p162_p10), %s288_s23, 4  ;;  %s461_s27 = int_to_ptr.hbm [resolvable:$true] %s460_s27 }
  0x14   : > { %v201_v0 = vld [vmem:[%s658_s1] sm:$0xff]  ;;  %v526_v1 = vmov 0   ;;  %v527_v2 = vmov 1   ;;  %v528_v3 = vmov 3   ;;  %v529_v5 = vmov 2   ;;  %s191_s30 = scalar_select %p190_p11, %s516_s15, 1 }
  0x15   : > { %441 = vset.pattern.permute.xlu0 %v526_v1  ;;  %442 = vset.pattern.permute.xlu1 %v527_v2  ;;  %v200_v4 = vld [vmem:[%s659_s2] sm:$0xff]  ;;  %s188_s15 = scalar_lea.vmem [#allocation2], %s369_s9  ;;  %s462_s28 = scalar_lea.hbm %s461_s27, 16 }
  0x16   : > { %205 = vperm.xlu0 %441, %v201_v0   ;;  %225 = vperm.xlu1 %442, %v201_v0   ;;  %s380_s4 = sshll.u32 %s191_s30, 3  ;;  %s285_s21 = sshll.u32 %s188_s15, 4  ;;  %s286_s21 = int_to_ptr.vmem [resolvable:$true] %s285_s21 }
  0x17   : > { %444 = vset.pattern.permute.xlu2 %v528_v3  ;;  %s197_s7 = scalar_lea.vmem %s657_s0, %s380_s4  ;;  %p463_p12 = scmp.ne.s32.totalorder %s461_s27, %s462_s28 }
  0x18   : > { %255 = vperm.xlu2 %444, %v201_v0   ;;  %v202_v7 = vld [vmem:[%s197_s7] ss:$4 sm:$0x3]  ;;  %v372_v9 = vld [vmem:[%s197_s7 + $0x1] ss:$4 sm:$0x3]  ;;  %p467_p1 = scmp.lt.s32.totalorder %s461_s27, %s660_s3 }
  0x19   : > { %v209_v10 = vperm.slane %v202_v7, 0  ;;  %v210_v11 = vperm.slane %v202_v7, 1  ;;  %v373_v12 = vld [vmem:[%s197_s7 + $0x2] ss:$4 sm:$0x3]  ;;  %v229_v14 = vperm.slane %v372_v9, 0  ;;  %p464_p13 = pnand %p463_p12, %p590_p4 }
  0x1a   : > { %v374_v13 = vld [vmem:[%s197_s7 + $0x3] ss:$4 sm:$0x3]  ;;  %v230_v15 = vperm.slane %v372_v9, 1  ;;  %v244_v16 = vperm.slane %v373_v12, 0  ;;  %v245_v17 = vperm.slane %v373_v12, 1 }
  0x1b   : > { %v259_v20 = vperm.slane %v374_v13, 0  ;;  %v260_v21 = vperm.slane %v374_v13, 1  ;;  %p465_p0 = pneg %p464_p13  ;;  %s466_s4 = scalar_lea.hbm %s660_s3, 32 }
  0x1c   : > { %p468_p2 = scmp.lt.s32.totalorder %s466_s4, %s462_s28 }
  0x1e   : > { %217 = vperm.xlu0 %441, %v200_v4   ;;  %443 = vset.pattern.permute.xlu1 %v529_v5  ;;  %p469_p3 = por %p468_p2, %p467_p1 }
  0x1f   : > { %240 = vperm.xlu1 %443, %v201_v0  }
  0x20   : > { %p470_p5 = pnand %p469_p3, %p465_p0 }
  0x26   : > { %445 = vset.pattern.permute.xlu0 %v528_v3 }
  0x72   : > { %v256_v23 = vpop.permute.xlu2 %255 }
  0x73   : > { %v263_v33 = vmul.f32 %v259_v20, %v256_v23  ;;  %v264_v34 = vmul.f32 %v260_v21, %v256_v23 }
  0x88   : > { %v206_v6 = vpop.permute.xlu0 %205  ;;  %v226_v8 = vpop.permute.xlu1 %225 }
  0x89   : > { %v213_v18 = vmul.f32 %v209_v10, %v206_v6  ;;  %v214_v19 = vmul.f32 %v210_v11, %v206_v6  ;;  %v233_v24 = vmul.f32 %v229_v14, %v226_v8  ;;  %v234_v25 = vmul.f32 %v230_v15, %v226_v8 }
  0x90   : > { %v218_v22 = vpop.permute.xlu0 %217 }
  0x91   : > { %v220_v26 = vadd.f32 %v218_v22, %v213_v18  ;;  %v221_v27 = vadd.f32 %v218_v22, %v214_v19  ;;  %v241_v28 = vpop.permute.xlu1 %240 }
  0x92   : > { %v248_v29 = vmul.f32 %v244_v16, %v241_v28  ;;  %v249_v30 = vmul.f32 %v245_v17, %v241_v28 }
  0x93   : > { %v235_v31 = vadd.f32 %v233_v24, %v220_v26  ;;  %v236_v32 = vadd.f32 %v234_v25, %v221_v27 }
  0x95   : > { %v250_v35 = vadd.f32 %v248_v29, %v235_v31  ;;  %v251_v36 = vadd.f32 %v249_v30, %v236_v32 }
  0x97   : > { %v265_v37 = vadd.f32 %v263_v33, %v250_v35  ;;  %v266_v38 = vadd.f32 %v264_v34, %v251_v36 }
  0x99   : > { %267 = vst [vmem:[%s188_s15] sm:$0xff] %v265_v37 }
  0x9a   : > { %268 = vst [vmem:[%s188_s15 + $0x8] sm:$0xff] %v266_v38 }
  0x9b   : > { %473 = shalt.err (!%p470_p5)
}
  0x9c   : > { %382 = dma.vmem_to_hbm [thread:$0]  (%p590_p4), %s286_s21, 256, %s288_s23, %s270_s26  }
  0x9d PF: > { %p388_p6 = scmp.ge.s32.totalorder %s524_s17, 2  ;;  %s299_s7 = sand.u32 1, %s504_s12  }
  0x9e   : > { %s300_s8 = scalar_lea.sflag [#allocation3], %s299_s7 }
  0x9f   : > { %p385_p7 = pnand %p388_p6, %p597_p8 }
  0xa1   : > { %p386_p9 = pneg %p385_p7 }
  0xa3   : > { %499 = dma.done.wait (%p386_p9), %s300_s8, 256  }
  0xa4   : > { %501 = vsyncadd (%p386_p9), %s300_s8, 4294967040  ;;  %s16_s17 = sadd.s32 1, %s524_s17   ;;  %s663_s12 = smov %s508_s13 }
  0xa5   : > { %p13_p10 = scmp.ge.s32.totalorder %s16_s17, 4   ;;  %s664_s13 = smov %s512_s14 }
  0xa6   : > { %s665_s14 = smov %s603_s25  ;;  %s666_s15 = smov %s520_s16 }
  0xa7   : > { %s667_s16 = smov %s669_s20  ;;  %15 = sbr.rel (!%p13_p10) target bundleno = 4 (0x4), region = 70 }
  0xac   :  { %306 = vsyncpa [#allocation3], 1 }
  0xad   :  { %308 = vsyncpa [#allocation3 + $0x1], 1 }

</bundles_post_ra>
